<compile_context>
chip_gen: v7x
topology: tpu7x:2x2x1
jax: 0.10.0
libtpu: 0.0.40
codegen_flags: <defaults>
</compile_context>

<pallas_src>
import math
from functools import partial

import jax
import jax.numpy as jnp
from jax.experimental import pallas as pl
from jax.experimental.pallas import tpu as pltpu


# -----------------------------------------------------------------------------
# Kernel: one grid step = (batch element b, head h).
# -----------------------------------------------------------------------------
def _mha_head_kernel(x_ref, wqkv_ref, wproj_ref, bproj_ref, out_ref, wei_ref):
    """
    x_ref     : (1, T, E)   bf16  resident across the head axis (same block idx)
    wqkv_ref  : (E, 3*Hp)   bf16  this head's [q | k | v] columns (q pre-scaled)
    wproj_ref : (Hp, E)     bf16  this head's rows of the output projection
    bproj_ref : (1, E)      f32
    out_ref   : (1, T, E)   f32   accumulated across heads, written back on b change
    wei_ref   : (1, 1, T, T)      this (head, batch) attention map
    """
    h = pl.program_id(1)
    Hp = wproj_ref.shape[0]

    x = x_ref[0]                                             # (T, E) bf16

    # Per-head fused Q/K/V projection: one (T,E)@(E,3*Hp) MXU matmul, f32 accum.
    qkv = jnp.dot(x, wqkv_ref[...],
                  preferred_element_type=jnp.float32).astype(jnp.bfloat16)

    # 128-lane-aligned static slices (Hp is a multiple of 128 by construction).
    q = qkv[:, 0 * Hp:1 * Hp]                                # 1/sqrt(H) already folded in
    k = qkv[:, 1 * Hp:2 * Hp]
    v = qkv[:, 2 * Hp:3 * Hp]

    # scores = q @ k^T (NT matmul, bf16 operands, f32 accumulation).
    # TODO(synk): if XLU binds at large T (k transpose), produce k pre-transposed.
    s = jax.lax.dot_general(q, k, (((1,), (1,)), ((), ())),
                            preferred_element_type=jnp.float32)       # (T, T) f32

    # Numerically stable softmax, all in f32; reciprocal rides the EUP slot.
    m = jnp.max(s, axis=-1, keepdims=True)
    e = jnp.exp(s - m)
    wei = e * pl.reciprocal(jnp.sum(e, axis=-1, keepdims=True), approx=True)

    wei_ref[0, 0] = wei.astype(wei_ref.dtype)

    # head_out = wei @ v, then this head's slice of the output projection.
    # Summing per-head projections over h is exactly proj(concat(heads)).
    head_out = jnp.dot(wei.astype(jnp.bfloat16), v,
                       preferred_element_type=jnp.float32)            # (T, Hp)
    contrib = jnp.dot(head_out.astype(jnp.bfloat16), wproj_ref[...],
                      preferred_element_type=jnp.float32)             # (T, E)

    @pl.when(h == 0)
    def _():
        out_ref[0] = contrib + bproj_ref[...]        # init accumulator with bias

    @pl.when(h > 0)
    def _():
        out_ref[0] = out_ref[0] + contrib


# -----------------------------------------------------------------------------
# One-time weight repack (parameter-init time, NOT per forward call).
# -----------------------------------------------------------------------------
def pack_mha_params(wq, wk, wv, w_proj, b_proj, *, compute_dtype=jnp.bfloat16):
    """wq/wk/wv: (n_heads, E, H); w_proj: (n_heads*H, E); b_proj: (E,).

    Returns:
      wqkv  (E, 3*n_heads*Hp)  per-head [q|k|v] column groups, 1/sqrt(H) folded
                               into q, head width zero-padded to Hp (128-lane
                               multiple) so in-kernel slices are lane-aligned.
      wproj (n_heads*Hp, E)    per-head row slabs, zero rows at the padding.
      bproj (1, E) f32
    (Zero padding is numerically exact: padded q/k/v columns are 0, padded
     w_proj rows are 0, so all products are unchanged.)
    """
    n_heads, E, H = wq.shape
    Hp = ((H + 127) // 128) * 128
    scale = 1.0 / math.sqrt(H)

    def pad_c(w):                                   # (E, H) -> (E, Hp)
        return jnp.pad(w, ((0, 0), (0, Hp - H)))

    cols = []
    for h in range(n_heads):
        cols += [pad_c(wq[h] * scale), pad_c(wk[h]), pad_c(wv[h])]
    wqkv = jnp.concatenate(cols, axis=-1).astype(compute_dtype)       # (E, 3*nh*Hp)

    rows = [jnp.pad(w_proj[h * H:(h + 1) * H], ((0, Hp - H), (0, 0)))
            for h in range(n_heads)]
    wproj = jnp.concatenate(rows, axis=0).astype(compute_dtype)       # (nh*Hp, E)

    bproj = b_proj.reshape(1, E).astype(jnp.float32)
    return wqkv, wproj, bproj


# -----------------------------------------------------------------------------
# Forward wrapper
# -----------------------------------------------------------------------------
def multi_head_attention(x, wqkv, wproj, bproj, *, n_heads,
                         attn_maps_dtype=jnp.float32):
    """x: (B, T, E) + packed params.  Returns (out (B,T,E) f32,
    attn_maps (n_heads,B,T,T) attn_maps_dtype)."""
    B, T, E = x.shape
    Hp = wproj.shape[0] // n_heads
    assert wqkv.shape == (E, 3 * n_heads * Hp)

    x = x.astype(wqkv.dtype)      # bf16 activations: halves x DMA, MXU-native

    out, attn_maps = pl.pallas_call(
        _mha_head_kernel,
        out_shape=(
            jax.ShapeDtypeStruct((B, T, E), jnp.float32),
            jax.ShapeDtypeStruct((n_heads, B, T, T), attn_maps_dtype),
        ),
        grid=(B, n_heads),
        in_specs=[
            # x: fetched once per batch element (index constant over h)
            pl.BlockSpec((1, T, E), lambda b, h: (b, 0, 0)),
            # per-head weight slabs: pipelined across the head axis
            pl.BlockSpec((E, 3 * Hp), lambda b, h: (0, h)),
            pl.BlockSpec((Hp, E), lambda b, h: (h, 0)),
            pl.BlockSpec((1, E), lambda b, h: (0, 0)),
        ],
        out_specs=(
            # output resident across the head (reduction) axis
            pl.BlockSpec((1, T, E), lambda b, h: (b, 0, 0)),
            pl.BlockSpec((1, 1, T, T), lambda b, h: (h, b, 0, 0)),
        ),
        compiler_params=pltpu.CompilerParams(
            dimension_semantics=("parallel", "arbitrary")),
    )(x, wqkv, wproj, bproj)

    return out, attn_maps


# -----------------------------------------------------------------------------
# Pure-JAX reference (f32) for validation
# -----------------------------------------------------------------------------
def _reference(x, wq, wk, wv, w_proj, b_proj):
    n_heads, E, H = wq.shape
    outs, weis = [], []
    for h in range(n_heads):
        q = x @ wq[h]
        k = x @ wk[h]
        v = x @ wv[h]
        s = (q @ jnp.swapaxes(k, -1, -2)) / math.sqrt(H)
        w = jax.nn.softmax(s, axis=-1)
        outs.append(w @ v)
        weis.append(w)
    cat = jnp.concatenate(outs, axis=-1)
    return cat @ w_proj + b_proj, jnp.stack(weis, axis=0)


if __name__ == "__main__":
    # Small deterministic example: embed_size=32, head_size=16, n_heads=4
    B, T, E, H, n_heads = 2, 8, 32, 16, 4

    key = jax.random.PRNGKey(0)
    kx, kq, kk, kv, kw, kb = jax.random.split(key, 6)

    x = jax.random.normal(kx, (B, T, E), dtype=jnp.float32)
    wq = jax.random.normal(kq, (n_heads, E, H), dtype=jnp.float32) * 0.05
    wk = jax.random.normal(kk, (n_heads, E, H), dtype=jnp.float32) * 0.05
    wv = jax.random.normal(kv, (n_heads, E, H), dtype=jnp.float32) * 0.05
    w_proj = jax.random.normal(kw, (n_heads * H, E), dtype=jnp.float32) * 0.05
    b_proj = jax.random.normal(kb, (E,), dtype=jnp.float32) * 0.05

    # One-time pack (init-time in a real model), then jit the forward only.
    wqkv, wproj_p, bproj_p = pack_mha_params(wq, wk, wv, w_proj, b_proj)
    fwd = jax.jit(partial(multi_head_attention, n_heads=n_heads,
                          attn_maps_dtype=jnp.bfloat16))

    out, attn_maps = fwd(x, wqkv, wproj_p, bproj_p)
    out = jax.block_until_ready(out)
    attn_maps = jax.block_until_ready(attn_maps)

    # Validate against the pure-f32 reference (bf16 matmul inputs / bf16 attn
    # maps loosen the tolerance vs. the previous pure-f32 kernel).
    ref_out, ref_wei = _reference(x, wq, wk, wv, w_proj, b_proj)
    assert out.shape == (B, T, E)
    assert attn_maps.shape == (n_heads, B, T, T)
    assert jnp.allclose(out, ref_out, atol=2e-2, rtol=2e-2)
    assert jnp.allclose(attn_maps.astype(jnp.float32), ref_wei, atol=1e-2, rtol=1e-2)

    print("KERNEL_OK")
</pallas_src>

<mosaic_0001>
module attributes {stable_mosaic.version = 11 : i64} {
  func.func @_mha_head_kernel(%arg0: i32, %arg1: i32, %arg2: memref<1x8x32xbf16, #tpu.memory_space<vmem>>, %arg3: memref<32x384xbf16, #tpu.memory_space<vmem>>, %arg4: memref<128x32xbf16, #tpu.memory_space<vmem>>, %arg5: memref<1x32xf32, #tpu.memory_space<vmem>>, %arg6: memref<1x8x32xf32, #tpu.memory_space<vmem>>, %arg7: memref<1x1x8x8xbf16, #tpu.memory_space<vmem>>) attributes {dimension_semantics = [#tpu.dimension_semantics<parallel>, #tpu.dimension_semantics<arbitrary>], iteration_bounds = array<i64: 2, 4>, scalar_prefetch = 0 : i64, scratch_operands = 0 : i64, tpu.core_type = #tpu.core_type<tc>, window_params = [{transform_indices = @transform_0, window_bounds = array<i64: 1, 8, 32>}, {transform_indices = @transform_1, window_bounds = array<i64: 32, 384>}, {transform_indices = @transform_2, window_bounds = array<i64: 128, 32>}, {pipeline_mode = #tpu.pipeline_mode<synchronous>, transform_indices = @transform_3, window_bounds = array<i64: 1, 32>}, {transform_indices = @transform_4, window_bounds = array<i64: 1, 8, 32>}, {transform_indices = @transform_5, window_bounds = array<i64: 1, 1, 8, 8>}]} {
    %c0 = arith.constant 0 : index
    %c0_0 = arith.constant 0 : index
    %c0_1 = arith.constant 0 : index
    %0 = vector.load %arg2[%c0, %c0_0, %c0_1] : memref<1x8x32xbf16, #tpu.memory_space<vmem>>, vector<1x8x32xbf16>
    %1 = vector.shape_cast %0 : vector<1x8x32xbf16> to vector<8x32xbf16>
    %c0_2 = arith.constant 0 : index
    %c0_3 = arith.constant 0 : index
    %2 = vector.load %arg3[%c0_2, %c0_3] : memref<32x384xbf16, #tpu.memory_space<vmem>>, vector<32x384xbf16>
    %cst = arith.constant dense<0.000000e+00> : vector<8x384xf32>
    %3 = tpu.matmul %1, %2, %cst {dimension_numbers = #tpu.dot_dimension_numbers<[1], [0], [0], [1], [0, 0, 1, 1], [], []>} : vector<8x32xbf16>, vector<32x384xbf16>, vector<8x384xf32> -> vector<8x384xf32>
    %4 = arith.truncf %3 : vector<8x384xf32> to vector<8x384xbf16>
    %5 = vector.extract_strided_slice %4 {offsets = [0, 0], sizes = [8, 128], strides = [1, 1]} : vector<8x384xbf16> to vector<8x128xbf16>
    %6 = vector.extract_strided_slice %4 {offsets = [0, 128], sizes = [8, 128], strides = [1, 1]} : vector<8x384xbf16> to vector<8x128xbf16>
    %7 = vector.extract_strided_slice %4 {offsets = [0, 256], sizes = [8, 128], strides = [1, 1]} : vector<8x384xbf16> to vector<8x128xbf16>
    %cst_4 = arith.constant dense<0.000000e+00> : vector<8x8xf32>
    %8 = tpu.matmul %5, %6, %cst_4 {dimension_numbers = #tpu.dot_dimension_numbers<[1], [1], [0], [0], [0, 0, 1, 0], [], []>} : vector<8x128xbf16>, vector<8x128xbf16>, vector<8x8xf32> -> vector<8x8xf32>
    %cst_5 = arith.constant dense<0xFF800000> : vector<8xf32>
    %9 = vector.multi_reduction <maximumf>, %8, %cst_5 [1] : vector<8x8xf32> to vector<8xf32>
    %10 = vector.shape_cast %9 : vector<8xf32> to vector<8x1xf32>
    %11 = vector.broadcast %10 : vector<8x1xf32> to vector<8x8xf32>
    %12 = arith.subf %8, %11 : vector<8x8xf32>
    %13 = math.exp %12 : vector<8x8xf32>
    %cst_6 = arith.constant dense<0.000000e+00> : vector<8xf32>
    %14 = vector.multi_reduction <add>, %13, %cst_6 [1] : vector<8x8xf32> to vector<8xf32>
    %15 = vector.shape_cast %14 : vector<8xf32> to vector<8x1xf32>
    %16 = tpu.reciprocal %15 {approx = true} : vector<8x1xf32> -> vector<8x1xf32>
    %17 = vector.broadcast %16 : vector<8x1xf32> to vector<8x8xf32>
    %18 = arith.mulf %13, %17 : vector<8x8xf32>
    %19 = arith.truncf %18 : vector<8x8xf32> to vector<8x8xbf16>
    %c0_7 = arith.constant 0 : index
    %c0_8 = arith.constant 0 : index
    %c0_9 = arith.constant 0 : index
    %c0_10 = arith.constant 0 : index
    %20 = vector.load %arg7[%c0_7, %c0_8, %c0_9, %c0_10] : memref<1x1x8x8xbf16, #tpu.memory_space<vmem>>, vector<1x1x8x8xbf16>
    %21 = vector.shape_cast %20 : vector<1x1x8x8xbf16> to vector<8x8xbf16>
    %22 = vector.shape_cast %19 : vector<8x8xbf16> to vector<1x1x8x8xbf16>
    tpu.vector_store %arg7[%c0_7, %c0_8, %c0_9, %c0_10], %22 {strides = array<i32>} : memref<1x1x8x8xbf16, #tpu.memory_space<vmem>>, vector<1x1x8x8xbf16>,
    %23 = arith.truncf %18 : vector<8x8xf32> to vector<8x8xbf16>
    %cst_11 = arith.constant dense<0.000000e+00> : vector<8x128xf32>
    %24 = tpu.matmul %23, %7, %cst_11 {dimension_numbers = #tpu.dot_dimension_numbers<[1], [0], [0], [1], [0, 0, 1, 1], [], []>} : vector<8x8xbf16>, vector<8x128xbf16>, vector<8x128xf32> -> vector<8x128xf32>
    %25 = arith.truncf %24 : vector<8x128xf32> to vector<8x128xbf16>
    %c0_12 = arith.constant 0 : index
    %c0_13 = arith.constant 0 : index
    %26 = vector.load %arg4[%c0_12, %c0_13] : memref<128x32xbf16, #tpu.memory_space<vmem>>, vector<128x32xbf16>
    %cst_14 = arith.constant dense<0.000000e+00> : vector<8x32xf32>
    %27 = tpu.matmul %25, %26, %cst_14 {dimension_numbers = #tpu.dot_dimension_numbers<[1], [0], [0], [1], [0, 0, 1, 1], [], []>} : vector<8x128xbf16>, vector<128x32xbf16>, vector<8x32xf32> -> vector<8x32xf32>
    %c0_i32 = arith.constant 0 : i32
    %28 = arith.cmpi eq, %arg1, %c0_i32 : i32
    %29 = arith.extui %28 : i1 to i32
    %c0_i32_15 = arith.constant 0 : i32
    %30 = arith.cmpi ne, %29, %c0_i32_15 : i32
    scf.if %30 {
      %c0_18 = arith.constant 0 : index
      %c0_19 = arith.constant 0 : index
      %34 = vector.load %arg5[%c0_18, %c0_19] : memref<1x32xf32, #tpu.memory_space<vmem>>, vector<1x32xf32>
      %35 = vector.broadcast %34 : vector<1x32xf32> to vector<8x32xf32>
      %36 = arith.addf %27, %35 : vector<8x32xf32>
      %c0_20 = arith.constant 0 : index
      %c0_21 = arith.constant 0 : index
      %c0_22 = arith.constant 0 : index
      %37 = vector.load %arg6[%c0_20, %c0_21, %c0_22] : memref<1x8x32xf32, #tpu.memory_space<vmem>>, vector<1x8x32xf32>
      %38 = vector.shape_cast %37 : vector<1x8x32xf32> to vector<8x32xf32>
      %39 = vector.shape_cast %36 : vector<8x32xf32> to vector<1x8x32xf32>
      tpu.vector_store %arg6[%c0_20, %c0_21, %c0_22], %39 {strides = array<i32>} : memref<1x8x32xf32, #tpu.memory_space<vmem>>, vector<1x8x32xf32>,
    } else {
    }
    %c0_i32_16 = arith.constant 0 : i32
    %31 = arith.cmpi sgt, %arg1, %c0_i32_16 : i32
    %32 = arith.extui %31 : i1 to i32
    %c0_i32_17 = arith.constant 0 : i32
    %33 = arith.cmpi ne, %32, %c0_i32_17 : i32
    scf.if %33 {
      %c0_18 = arith.constant 0 : index
      %c0_19 = arith.constant 0 : index
      %c0_20 = arith.constant 0 : index
      %34 = vector.load %arg6[%c0_18, %c0_19, %c0_20] : memref<1x8x32xf32, #tpu.memory_space<vmem>>, vector<1x8x32xf32>
      %35 = vector.shape_cast %34 : vector<1x8x32xf32> to vector<8x32xf32>
      %36 = arith.addf %35, %27 : vector<8x32xf32>
      %c0_21 = arith.constant 0 : index
      %c0_22 = arith.constant 0 : index
      %c0_23 = arith.constant 0 : index
      %37 = vector.load %arg6[%c0_21, %c0_22, %c0_23] : memref<1x8x32xf32, #tpu.memory_space<vmem>>, vector<1x8x32xf32>
      %38 = vector.shape_cast %37 : vector<1x8x32xf32> to vector<8x32xf32>
      %39 = vector.shape_cast %36 : vector<8x32xf32> to vector<1x8x32xf32>
      tpu.vector_store %arg6[%c0_21, %c0_22, %c0_23], %39 {strides = array<i32>} : memref<1x8x32xf32, #tpu.memory_space<vmem>>, vector<1x8x32xf32>,
    } else {
    }
    return
  }
  func.func @transform_0(%arg0: i32, %arg1: i32) -> (i32, i32, i32) {
    %c0_i32 = arith.constant 0 : i32
    %c0_i32_0 = arith.constant 0 : i32
    %c0_i32_1 = arith.constant 0 : i32
    return %arg0, %c0_i32, %c0_i32_0 : i32, i32, i32
  }
  func.func @transform_1(%arg0: i32, %arg1: i32) -> (i32, i32) {
    %c0_i32 = arith.constant 0 : i32
    %c0_i32_0 = arith.constant 0 : i32
    return %c0_i32, %arg1 : i32, i32
  }
  func.func @transform_2(%arg0: i32, %arg1: i32) -> (i32, i32) {
    %c0_i32 = arith.constant 0 : i32
    %c0_i32_0 = arith.constant 0 : i32
    return %arg1, %c0_i32 : i32, i32
  }
  func.func @transform_3(%arg0: i32, %arg1: i32) -> (i32, i32) {
    %c0_i32 = arith.constant 0 : i32
    %c0_i32_0 = arith.constant 0 : i32
    %c0_i32_1 = arith.constant 0 : i32
    return %c0_i32, %c0_i32_0 : i32, i32
  }
  func.func @transform_4(%arg0: i32, %arg1: i32) -> (i32, i32, i32) {
    %c0_i32 = arith.constant 0 : i32
    %c0_i32_0 = arith.constant 0 : i32
    %c0_i32_1 = arith.constant 0 : i32
    return %arg0, %c0_i32, %c0_i32_0 : i32, i32, i32
  }
  func.func @transform_5(%arg0: i32, %arg1: i32) -> (i32, i32, i32, i32) {
    %c0_i32 = arith.constant 0 : i32
    %c0_i32_0 = arith.constant 0 : i32
    %c0_i32_1 = arith.constant 0 : i32
    return %arg1, %arg0, %c0_i32, %c0_i32_0 : i32, i32, i32, i32
  }
}

</mosaic_0001>

<bundles_post_ra>
// kernel: multi_head_attention.1
= control target key start
LH: loop header
LB: loop body
LE: loop exit
PB: predicated region body
PF: predicated region fallthrough
CT: control target
= control target key end

     0   :  { %s1612_s0 = inlined_call_operand.vmem [shape: bf16[2,8,32], index: 0, kind: input, shape index: {}]   ;;  %s1613_s1 = inlined_call_operand.vmem [shape: bf16[32,1536], index: 1, kind: input, shape index: {}]   ;;  %s1614_s2 = inlined_call_operand.vmem [shape: bf16[512,32], index: 2, kind: input, shape index: {}]   ;;  %s1615_s3 = inlined_call_operand.vmem [shape: f32[1,32], index: 3, kind: input, shape index: {}]   ;;  %s1616_s4 = inlined_call_operand.hbm [shape: f32[2,8,32], index: 4, kind: output, shape index: {0}]   ;;  %s1617_s5 = inlined_call_operand.hbm [shape: bf16[4,2,8,8], index: 5, kind: output, shape index: {1}]  }
   0x1   :  { %1623 = sst [smem:[#allocation14_spill]] %s1612_s0 }
   0x2   :  { %1624 = sst [smem:[#allocation15_spill]] %s1613_s1 }
   0x3   :  { %1625 = sst [smem:[#allocation16_spill]] %s1614_s2 }
   0x4   :  { %1626 = sst [smem:[#allocation17_spill]] %s1615_s3 }
   0x5   :  { %1627 = sst [smem:[#allocation18_spill]] %s1616_s4 }
   0x6   :  { %11 = vsyncpa [#allocation4], 0 }
   0x7   :  { %13 = vsyncpa [#allocation4 + $0x1], 0 }
   0x8   :  { %14 = vsyncpa [#allocation6], 0 }
   0x9   :  { %16 = vsyncpa [#allocation6 + $0x1], 0  ;;  %s1307_s18 = smov 0   ;;  %s1309_s19 = smov 0  }
   0xa   :  { %s1311_s20 = smov 0   ;;  %s1313_s21 = smov 0  }
   0xb   :  { %s1315_s22 = smov 0   ;;  %s1317_s23 = smov 0  }
   0xc   :  { %s1319_s24 = smov 0   ;;  %s1321_s25 = smov 0  }
   0xd   :  { %s1323_s26 = smov 0   ;;  %s1325_s27 = smov 0  }
   0xe   :  { %s1327_s28 = smov 0   ;;  %s1329_s29 = smov 0  }
   0xf   :  { %s1331_s30 = smov 0  }
  0x10 LB: > { %1628 = sst [smem:[#allocation9_spill]] %s1266_s29  ;;  %s860_s6 = sadd.s32 4294967295, %s1270_s30   ;;  %s1270_s30 = sphi %s1331_s30, %s22_s30   ;;  %s1266_s29 = sphi %s1329_s29, %s1663_s29   ;;  %s1262_s28 = sphi %s1327_s28, %s1662_s28   ;;  %s1258_s27 = sphi %s1325_s27, %s1650_s27   ;;  %s1254_s26 = sphi %s1323_s26, %s1661_s26   ;;  %s1250_s25 = sphi %s1321_s25, %s1660_s25   ;;  %s1246_s24 = sphi %s1319_s24, %s1659_s24   ;;  %s1242_s23 = sphi %s1317_s23, %s1658_s23   ;;  %s1238_s22 = sphi %s1315_s22, %s1657_s22   ;;  %s1234_s21 = sphi %s1313_s21, %s1656_s21   ;;  %s1230_s20 = sphi %s1311_s20, %s1655_s20   ;;  %s1226_s19 = sphi %s1309_s19, %s1654_s19   ;;  %s1222_s18 = sphi %s1307_s18, %s1653_s18  }
  0x11   : > { %s861_s7 = sadd.s32 4294967294, %s1270_s30   ;;  %s31_s8 = sadd.s32 1, %s1262_s28 }
  0x12   : > { %s34_s9 = sadd.s32 1, %s1266_s29  ;;  %p32_p0 = scmp.ge.s32.totalorder %s31_s8, 4 }
  0x13   : > { %s67_s10 = sadd.s32 1, %s1250_s25  ;;  %p74_p1 = scmp.ne.s32.totalorder %s1250_s25, %s1246_s24 }
  0x14   : > { %p75_p2 = scmp.eq.s32.totalorder %s1270_s30, 0  ;;  %s1665_s8 = smov (%p32_p0, %s31_s8), 0 }
  0x15   : > { %1629 = sst [smem:[#allocation10_spill]] %s1665_s8  ;;  %s1667_s9 = smov (!%p32_p0, %s34_s9), %s1266_s29 }
  0x16   : > { %s64_s11 = ssub.s32 %s1262_s28, %s1665_s8  ;;  %p1385_p3 = por %p75_p2, %p74_p1 }
  0x17   : > { %p36_p4 = scmp.ge.s32.totalorder %s1667_s9, 2  ;;  %p65_p5 = scmp.eq.s32.totalorder %s64_s11, 0 }
  0x18   : > { %s140_s13 = sadd.s32 1, %s1242_s23  ;;  %p150_p6 = scmp.ne.s32.totalorder %s1242_s23, %s1238_s22 }
  0x19   : > { %s1669_s9 = smov (%p36_p4, %s1667_s9), 0  ;;  %p1399_p7 = scmp.eq.s32.totalorder %s860_s6, 7 }
  0x1a   : > { %1631 = sst [smem:[#allocation11_spill]] %s1669_s9  ;;  %s137_s15 = ssub.s32 %s1266_s29, %s1669_s9 }
  0x1b   : > { %s1395_s14 = scalar_select %p65_p5, %s1250_s25, %s67_s10  }
  0x1c   : > { %p138_p8 = scmp.eq.s32.totalorder %s137_s15, 0  ;;  %p156_p9 = scmp.ne.s32.totalorder %s1238_s22, %s1234_s21 }
  0x1d   : > { %1632 = sst [smem:[#allocation12_spill]] %s1395_s14  ;;  %p1407_p10 = por %p1399_p7, %p150_p6 }
  0x1e   : > { %p157_p11 = scmp.eq.s32.totalorder %s861_s7, 7  ;;  %s165_s6 = sor.u32 %s137_s15, %s64_s11 }
  0x1f   : > { %s1412_s8 = scalar_select %p138_p8, %s1242_s23, %s140_s13  }
  0x20   : > { %p1414_p12 = por %p157_p11, %p156_p9  ;;  %p166_p13 = scmp.eq.s32.totalorder %s165_s6, 0 }
  0x21   : > { %1635 = sst [smem:[#allocation13_spill]] %s1412_s8  ;;  %s168_s9 = sadd.s32 1, %s1230_s20 }
  0x22   : > { %p178_p0 = scmp.ne.s32.totalorder %s1230_s20, %s1226_s19  ;;  %p184_p1 = scmp.ne.s32.totalorder %s1226_s19, %s1222_s18 }
  0x23   : > { %s1424_s29 = scalar_select %p166_p13, %s1230_s20, %s168_s9  }
  0x24   : > { %p1428_p2 = por %p178_p0, %p1399_p7  ;;  %p1432_p4 = por %p184_p1, %p157_p11 }
  0x25   : > { %p863_p5 = scmp.ge.s32.totalorder %s1270_s30, 8 }
  0x26   : > { %s1638_s7 = scalar_select %p1432_p4, 1, 0 }
  0x27   : > { %204 = sbr.rel (%p863_p5) target bundleno = 59 (0x3b), region = 20 }
  0x2e   : > { %214 = sbr.rel (!%p1385_p3) target bundleno = 59 (0x3b), region = 28  ;;  %s216_s11 = sand.u32 (%p1385_p3), 1, %s1250_s25  }
  0x2f   : > { %s906_s9 = smul.u32 (%p1385_p3), 12, %s1262_s28  ;;  %s1639_s1 = sld [smem:[#allocation15_spill]] (%p1385_p3) }
  0x30   : > { %s963_s13 = smul.u32 (%p1385_p3), 48, %s216_s11 }
  0x32   : > { %s218_s8 = scalar_lea.vmem (%p1385_p3), [#allocation2], %s963_s13 }
  0x35   : > { %s221_s6 = scalar_lea.vmem %s1639_s1, %s906_s9 }
  0x36   : > { %v236_v0 = vld [vmem:[%s221_s6] sm:$0xff]  ;;  %v238_v1 = vld [vmem:[%s221_s6 + $0x30] sm:$0xff]  ;;  %v865_v4 = vld [vmem:[%s221_s6 + $0x8] sm:$0xf] }
  0x37   : > { %v240_v2 = vld [vmem:[%s221_s6 + $0x60] sm:$0xff]  ;;  %237 = vst [vmem:[%s218_s8] sm:$0xff] %v236_v0  ;;  %239 = vst [vmem:[%s218_s8 + $0xc] sm:$0xff] %v238_v1  ;;  %v242_v3 = vld [vmem:[%s221_s6 + $0x90] sm:$0xff] }
  0x38   : > { %241 = vst [vmem:[%s218_s8 + $0x18] sm:$0xff] %v240_v2  ;;  %v867_v5 = vld [vmem:[%s221_s6 + $0x38] sm:$0xf]  ;;  %243 = vst [vmem:[%s218_s8 + $0x24] sm:$0xff] %v242_v3  ;;  %v869_v6 = vld [vmem:[%s221_s6 + $0x68] sm:$0xf] }
  0x39   : > { %866 = vst [vmem:[%s218_s8 + $0x8] sm:$0xf] %v865_v4  ;;  %868 = vst [vmem:[%s218_s8 + $0x14] sm:$0xf] %v867_v5  ;;  %v871_v7 = vld [vmem:[%s221_s6 + $0x98] sm:$0xf] }
  0x3a   : > { %870 = vst [vmem:[%s218_s8 + $0x20] sm:$0xf] %v869_v6  ;;  %872 = vst [vmem:[%s218_s8 + $0x2c] sm:$0xf] %v871_v7 }
  0x3b PF: > { %p873_p3 = scmp.ge.s32.totalorder %s1270_s30, 1  ;;  %p272_p6 = scmp.lt.s32.totalorder %s1270_s30, 9 }
  0x3d   : > { %p273_p7 = pnand %p873_p3, %p272_p6 }
  0x3e   : > { %s279_s12 = sand.u32 (!%p273_p7), 1, %s1246_s24   ;;  %s310_s11 = sand.u32 (!%p273_p7), 1, %s1238_s22   ;;  %v1272_v8 = vmov (!%p273_p7), 0   ;;  %v1273_v9 = vmov (!%p273_p7), 0.0   ;;  %vm373_vm0 = vcmask (!%p273_p7), 261120   ;;  %vm1274_vm1 = vmmov (!%p273_p7), 0  }
  0x3f   : > { %276 = sbr.rel (%p273_p7) target bundleno = 1315 (0x523), region = 58  ;;  %s1450_s13 = sshll.u32 (!%p273_p7), %s310_s11, 3  ;;  %409 = vmatprep.mubr.bf16.mxu1 (!%p273_p7), %v1272_v8  ;;  %943 = vmatprep.subr.bf16.mxu0 (!%p273_p7), %v1273_v9  ;;  %vm519_vm2 = vcmask (!%p273_p7), 1043456   ;;  %vm501_vm3 = vcmask (!%p273_p7), 64512   ;;  %vm514_vm4 = vcmask (!%p273_p7), 60416  }
  0x40   : > { %s964_s9 = smul.u32 (!%p273_p7), 48, %s279_s12  ;;  %p320_p8 = scmp.lt.s32.totalorder (!%p273_p7), %s1258_s27, 1  ;;  %959 = vmatprep.mubr.msk.bf16.mxu0 (!%p273_p7), %vm1274_vm1, %v1273_v9 }
  0x41   : > { %s1640_s0 = sld [smem:[#allocation14_spill]] (!%p273_p7)  ;;  %s1641_s2 = sld [smem:[#allocation16_spill]] (!%p273_p7) }
  0x42   : > { %s281_s8 = scalar_lea.vmem (!%p273_p7), [#allocation2], %s964_s9  ;;  %s877_s9 = sshll.u32 (!%p273_p7), %s1254_s26, 4 }
  0x43   : > { %v1084_v10 = vld [vmem:[%s281_s8 + $0x4] ss:$12 sps:$4 sm:$0xff] (!%p273_p7)   ;;  %v1086_v11 = vld [vmem:[%s281_s8] ss:$12 sps:$4 sm:$0xff] (!%p273_p7)   ;;  %v1087_v12 = vld [vmem:[%s281_s8 + $0x1c] ss:$12 sps:$4 sm:$0xff] (!%p273_p7)  }
  0x44   : > { %377 = vmatprep.subr.bf16.mxu1 (!%p273_p7), %v1084_v10  ;;  %v1089_v13 = vld [vmem:[%s281_s8 + $0x18] ss:$12 sps:$4 sm:$0xff] (!%p273_p7)   ;;  %v1090_v15 = vld [vmem:[%s281_s8 + $0x8] ss:$12 sps:$4 sm:$0xff] (!%p273_p7)   ;;  %v1091_v16 = vld [vmem:[%s281_s8 + $0x20] ss:$12 sps:$4 sm:$0xff] (!%p273_p7)  }
  0x45   : > { %378 = vmatpush1.bf16.msra.mxu1 (!%p273_p7), %v1086_v11  ;;  %p326_p9 = scmp.lt.s32.totalorder (!%p273_p7), %s877_s9, 63  ;;  %s1621_s6 = sand.u32 (!%p273_p7), 1, %s1226_s19  }
  0x46   : > { %s321_s15 = scalar_select %p320_p8, %s1258_s27, 1  ;;  %379 = vmatprep.subr.bf16.mxu1 %v1087_v12 }
  0x47   : > { %s1671_s9 = smov (!%p326_p9, %s877_s9), 63  ;;  %p896_p11 = scmp.ne.s32.totalorder %s1254_s26, 0 }
  0x48   : > { %s876_s16 = sshll.u32 %s321_s15, 2  ;;  %s878_s8 = sshll.u32 %s1671_s9, 2 }
  0x49   : > { %s323_s12 = scalar_lea.vmem %s1640_s0, %s876_s16  ;;  %380 = vmatpush1.bf16.msra.mxu1 %v1089_v13  ;;  %s1474_s24 = scalar_lea.vmem %s1641_s2, %s878_s8 }
  0x4a   : > { %v332_v14 = vld [vmem:[%s323_s12] sm:$0xf]  ;;  %923 = vmatprep.subr.bf16.mxu1 %v1273_v9  ;;  %v1093_v40 = vld [vmem:[%s1474_s24 + $0x8] sm:$0xff]   ;;  %v1094_v41 = vld [vmem:[%s1474_s24 + $0x10] sm:$0xff]   ;;  %s1493_s12 = sshll.u32 %s1621_s6, 2  ;;  %s312_s8 = scalar_lea.vmem [#allocation3], %s1450_s13 }
  0x4b   : > { %v1092_v39 = vld [vmem:[%s1474_s24] sm:$0xff]   ;;  %v1095_v42 = vld [vmem:[%s1474_s24 + $0x18] sm:$0xff]   ;;  %v1097_v44 = vld [vmem:[%s1474_s24 + $0x28] sm:$0xff]   ;;  %s1622_s9 = scalar_lea.vmem [#allocation5], %s1493_s12  ;;  %s1642_s3 = sld [smem:[#allocation17_spill]] (!%p896_p11) }
  0x4c   : > { %885 = vmatmul.mubr.msk.bf16.vlgmr.msra.gmra.mrb[0].mxu1 %vm373_vm0, %v332_v14  ;;  %944 = vmatpush3.bf16.msra.mxu0 %v1092_v39  ;;  %v1096_v43 = vld [vmem:[%s1474_s24 + $0x20] sm:$0xff]   ;;  %v1098_v45 = vld [vmem:[%s1474_s24 + $0x30] sm:$0xff]   ;;  %v1099_v50 = vld [vmem:[%s1474_s24 + $0x38] sm:$0xff]  }
  0x4d   : > { %924 = vmatpush3.bf16.msra.mxu1 %v1090_v15  ;;  %927 = vmatprep.mubr.msk.bf16.mxu1 %vm1274_vm1, %v1273_v9 }
  0x4e   : > { %925 = vmatprep.subr.bf16.mxu1 %v1273_v9  ;;  %945 = vmatprep.subr.bf16.mxu0 %v1273_v9 }
  0x50   : > { %946 = vmatpush3.bf16.msra.mxu0 %v1093_v40 }
  0x51   : > { %926 = vmatpush3.bf16.msra.mxu1 %v1091_v16  ;;  %947 = vmatprep.subr.bf16.mxu0 %v1273_v9  ;;  %v897_v60 = vld [vmem:[%s1642_s3] ss:$0 sm:$0xff] (!%p896_p11) }
  0x52   : > { %931 = vmatprep.subr.bf16.mxu1 %v1273_v9 }
  0x54   : > { %928 = vmatmul.mubr.msk.bf16.vlgmr.msra.gmra.mrb[4].mxu1 %vm373_vm0, %v332_v14  ;;  %948 = vmatpush3.bf16.msra.mxu0 %v1094_v41 }
  0x55   : > { %933 = vmatprep.mubr.msk.bf16.mxu1 %vm1274_vm1, %v1273_v9  ;;  %949 = vmatprep.subr.bf16.mxu0 %v1273_v9 }
  0x58   : > { %950 = vmatpush3.bf16.msra.mxu0 %v1095_v42 }
  0x59   : > { %951 = vmatprep.subr.bf16.mxu0 %v1273_v9 }
  0x5c   : > { %952 = vmatpush3.bf16.msra.mxu0 %v1096_v43 }
  0x5d   : > { %953 = vmatprep.subr.bf16.mxu0 %v1273_v9 }
  0x60   : > { %954 = vmatpush3.bf16.msra.mxu0 %v1097_v44 }
  0x61   : > { %955 = vmatprep.subr.bf16.mxu0 %v1273_v9 }
  0x64   : > { %956 = vmatpush3.bf16.msra.mxu0 %v1098_v45 }
  0x65   : > { %957 = vmatprep.subr.bf16.mxu0 %v1273_v9 }
  0x68   : > { %958 = vmatpush3.bf16.msra.mxu0 %v1099_v50 }
 0x11f   : > { %v411_v17 = vpop.f32.mrb[0].mxu1 }
 0x120   : > { %v413_v18 = vpop.f32.mrb[1].mxu1  ;;  %v458_v22 = vpack.c.bf16 %v411_v17, %v411_v17 }
 0x121   : > { %v459_v19 = vpack.c.bf16 %v413_v18, %v413_v18  ;;  %v415_v20 = vpop.f32.mrb[2].mxu1 }
 0x122   : > { %v416_v21 = vpop.f32.mrb[3].mxu1 }
 0x123   : > { %932 = vmatpush3.bf16.xpose.msra.mxu1 %v459_v19 }
 0x124   : > { %937 = vmatprep.subr.bf16.mxu1 %v1273_v9 }
 0x127   : > { %v452_v23 = vpop.f32.mrb[4].mxu1 }
 0x128   : > { %v460_v24 = vpack.c.bf16 %v452_v23, %v452_v23  ;;  %v929_v25 = vpop.f32.mrb[5].mxu1 }
 0x129   : > { %v455_v26 = vpop.f32.mrb[6].mxu1 }
 0x12a   : > { %934 = vmatmul.mubr.bf16.vlgmr.msra.gmra.mrb[8].mxu1 %v458_v22  ;;  %v521_v27 = vsel %vm519_vm2, %v460_v24, 0  ;;  %v930_v28 = vpop.f32.mrb[7].mxu1 }
 0x12b   : > { %939 = vmatprep.mubr.msk.bf16.mxu1 %vm1274_vm1, %v1273_v9  ;;  %938 = vmatpush3.bf16.msra.mxu1 %v521_v27 }
 0x1fd   : > { %v495_v29 = vpop.f32.mrb[8].mxu1 }
 0x1fe   : > { %v935_v30 = vpop.f32.mrb[9].mxu1  ;;  %v502_v31 = vsel %vm501_vm3, %v495_v29, -inf }
 0x1ff   : > { %503 = vmax.xlane.f32.xlu0 %v502_v31  ;;  %v498_v32 = vpop.f32.mrb[10].mxu1 }
 0x200   : > { %v936_v33 = vpop.f32.mrb[11].mxu1 }
 0x28c   : > { %v504_v34 = vpop.xlane.xlu0 %503 }
 0x28d   : > { %v505_v35 = vsub.f32 %v495_v29, %v504_v34 }
 0x28f   : > { %v506_v36 = vmul.f32 1.442695, %v505_v35 }
 0x291   : > { %1100 = vpow2.f32 %v506_v36 }
 0x29b   : > { %v1101_v37 = vpop.eup %1100 }
 0x29c   : > { %v508_v38 = vsel %vm501_vm3, %v1101_v37, 0.0 }
 0x29d   : > { %509 = vadd.xlane.f32.xlu0 %v508_v38 }
 0x32a   : > { %v510_v46 = vpop.xlane.xlu0 %509 }
 0x32b   : > { %1102 = vrcp.f32 %v510_v46 }
 0x335   : > { %v1103_v47 = vpop.eup %1102 }
 0x336   : > { %v512_v48 = vmul.f32 %v1103_v47, %v1101_v37 }
 0x338   : > { %v513_v49 = vpack.c.bf16 %v512_v48, %v512_v48 }
 0x33a   : > { %515 = vst.msk [vmem:[%s1622_s9] sm:$0xf] %vm514_vm4, %v513_v49  ;;  %940 = vmatmul.mubr.msk.bf16.vlgmr.msra.gmra.mrb[12].mxu1 %vm501_vm3, %v513_v49 }
 0x40d   : > { %v557_v51 = vpop.f32.mrb[12].mxu1 }
 0x40e   : > { %v563_v52 = vpack.c.bf16 %v557_v51, %v557_v51  ;;  %v941_v53 = vpop.f32.mrb[13].mxu1 }
 0x40f   : > { %v560_v54 = vpop.f32.mrb[14].mxu1 }
 0x410   : > { %v942_v55 = vpop.f32.mrb[15].mxu1  ;;  %960 = vmatmul.mubr.bf16.vlgmr.msra.gmra.mrb[0].mxu0 %v563_v52 }
 0x4e0   : > { %671 = sbr.rel (%p896_p11) target bundleno = 1255 (0x4e7), region = 66 }
 0x4e3   : > { %v662_v56 = vpop.f32.mrb[0].mxu0 }
 0x4e4   : > { %v961_v57 = vpop.f32.mrb[1].mxu0  ;;  %v679_v61 = vadd.f32 (!%p896_p11), %v897_v60, %v662_v56 }
 0x4e5   : > { %v665_v58 = vpop.f32.mrb[2].mxu0 }
 0x4e6   : > { %v962_v59 = vpop.f32.mrb[3].mxu0  ;;  %680 = vst.msk [vmem:[%s312_s8] sm:$0xff] (!%p896_p11), %vm373_vm0, %v679_v61 }
 0x4e7 PF: > { %p898_p13 = scmp.le.s32.totalorder %s1254_s26, 0 }
 0x4e9   : > { %684 = sbr.rel (%p898_p13) target bundleno = 1265 (0x4f1), region = 70 }
 0x4ed   : > { %v685_v62 = vld [vmem:[%s312_s8] sm:$0xff] (!%p898_p13) }
 0x4ee   : > { %v686_v63 = vadd.f32 (!%p898_p13), %v685_v62, %v662_v56 }
 0x4f0   : > { %687 = vst.msk [vmem:[%s312_s8] sm:$0xff] %vm373_vm0, %v686_v63 }
 0x4f1 PF: > { %s901_s13 = sshll.u32 %s1258_s27, 7  ;;  %s1643_s4 = sld [smem:[#allocation18_spill]] }
 0x4f2   : > { %s707_s16 = sshll.u32 %s312_s8, 4  ;;  %s689_s9 = scalar_lea.sflag [#allocation4], %s310_s11  ;;  %s708_s16 = int_to_ptr.vmem [resolvable:$true] %s707_s16 }
 0x4f3   : > { %s1104_s0 = scalar_lea.vmem %s708_s16, 128  ;;  %s1275_s1 = smov [#allocation3]  }
 0x4f4   : > { %p1105_p0 = scmp.ne.s32.totalorder %s708_s16, %s1104_s0  ;;  %s1108_s2 = sshll.u32 %s1275_s1, 4  ;;  %s1109_s2 = int_to_ptr.vmem [resolvable:$false] %s1108_s2 }
 0x4f5   : > { %s1110_s3 = scalar_lea.vmem %s1109_s2, 256  ;;  %p1111_p3 = scmp.lt.s32.totalorder %s708_s16, %s1109_s2 }
 0x4f6   : > { %p1106_p1 = pnand %p1105_p0, %p1407_p10  ;;  %p1112_p6 = scmp.lt.s32.totalorder %s1110_s3, %s1104_s0 }
 0x4f7   : > { %s1512_s15 = scalar_lea.hbm %s1643_s4, %s901_s13 }
 0x4f8   : > { %p1107_p5 = pneg %p1106_p1  ;;  %p1113_p7 = por %p1112_p6, %p1111_p3 }
 0x4fa   : > { %p1114_p8 = pnand %p1113_p7, %p1107_p5 }
 0x4fc   : > { %1117 = shalt.err (!%p1114_p8)
}
 0x4fd   : > { %s1118_s11 = scalar_lea.hbm %s1512_s15, 128  ;;  %s1122_s1 = scalar_lea.hbm %s1643_s4, 256 }
 0x4fe   : > { %p1119_p9 = scmp.ne.s32.totalorder %s1512_s15, %s1118_s11  ;;  %p1123_p0 = scmp.lt.u32.totalorder %s1512_s15, %s1643_s4 }
 0x4ff   : > { %p1124_p1 = scmp.lt.u32.totalorder %s1122_s1, %s1118_s11  ;;  %p1126_p3 = scmp.lt.u32.totalorder %s1118_s11, %s1512_s15 }
 0x500   : > { %p1120_p11 = pnand %p1119_p9, %p1407_p10 }
 0x501   : > { %p1125_p5 = por %p1124_p1, %p1123_p0 }
 0x502   : > { %p1121_p13 = pneg %p1120_p11 }
 0x503   : > { %p1127_p6 = por %p1126_p3, %p1125_p5 }
 0x505   : > { %p1128_p7 = pnand %p1127_p6, %p1121_p13 }
 0x507   : > { %1131 = shalt.err (!%p1128_p7)
}
 0x508   : > { %965 = dma.vmem_to_hbm [thread:$0]  (%p1407_p10), %s708_s16, 128, %s1512_s15, %s689_s9  }
 0x509   : > { %s902_s0 = sshll.u32 %s1254_s26, 1  ;;  %s1644_s3 = scalar_lea.vmem [#allocation5], %s1493_s12 }
 0x50a   : > { %s722_s24 = sshll.u32 %s1644_s3, 4  ;;  %s718_s6 = sadd.s32 %s1258_s27, %s902_s0  ;;  %s1537_s24 = int_to_ptr.vmem [resolvable:$true] %s722_s24 }
 0x50b   : > { %s903_s11 = sshll.u32 %s718_s6, 6  ;;  %s1645_s13 = sand.u32 1, %s1226_s19  }
 0x50c   : > { %s720_s17 = scalar_lea.hbm %s1617_s5, %s903_s11  ;;  %s694_s2 = scalar_lea.sflag [#allocation6], %s1645_s13 }
 0x50d   : > { %s1132_s4 = scalar_lea.vmem %s1537_s24, 64  ;;  %s1276_s26 = smov [#allocation5]  }
 0x50e   : > { %p1133_p8 = scmp.ne.s32.totalorder %s1537_s24, %s1132_s4  ;;  %s1136_s12 = sshll.u32 %s1276_s26, 4  ;;  %s1137_s12 = int_to_ptr.vmem [resolvable:$false] %s1136_s12 }
 0x50f   : > { %s1138_s27 = scalar_lea.vmem %s1137_s12, 128  ;;  %p1139_p11 = scmp.lt.s32.totalorder %s1537_s24, %s1137_s12 }
 0x510   : > { %p1134_p10 = pnand %p1133_p8, %p1428_p2  ;;  %p1140_p13 = scmp.lt.s32.totalorder %s1138_s27, %s1132_s4 }
 0x512   : > { %p1135_p9 = pneg %p1134_p10  ;;  %p1141_p0 = por %p1140_p13, %p1139_p11 }
 0x514   : > { %p1142_p1 = pnand %p1141_p0, %p1135_p9 }
 0x516   : > { %1145 = shalt.err (!%p1142_p1)
}
 0x517   : > { %s1146_s9 = scalar_lea.hbm %s720_s17, 64  ;;  %s1150_s0 = scalar_lea.hbm %s1617_s5, 512 }
 0x518   : > { %p1147_p5 = scmp.ne.s32.totalorder %s720_s17, %s1146_s9  ;;  %p1151_p7 = scmp.lt.u32.totalorder %s720_s17, %s1617_s5 }
 0x519   : > { %p1152_p8 = scmp.lt.u32.totalorder %s1150_s0, %s1146_s9  ;;  %p1154_p4 = scmp.lt.u32.totalorder %s1146_s9, %s720_s17 }
 0x51a   : > { %p1148_p3 = pnand %p1147_p5, %p1428_p2 }
 0x51b   : > { %p1153_p10 = por %p1152_p8, %p1151_p7 }
 0x51c   : > { %p1149_p6 = pneg %p1148_p3 }
 0x51d   : > { %p1155_p11 = por %p1154_p4, %p1153_p10 }
 0x51f   : > { %p1156_p9 = pnand %p1155_p11, %p1149_p6 }
 0x521   : > { %1159 = shalt.err (!%p1156_p9)
}
 0x522   : > { %966 = dma.vmem_to_hbm [thread:$0]  (%p1428_p2), %s1537_s24, 64, %s720_s17, %s694_s2  }
 0x523 PF: > { %p976_p13 = scmp.ge.s32.totalorder %s1270_s30, 2  ;;  %s734_s4 = sand.u32 1, %s1234_s21  }
 0x524   : > { %s735_s11 = scalar_lea.sflag [#allocation4], %s734_s4 }
 0x525   : > { %p970_p0 = pnand %p976_p13, %p1414_p12 }
 0x527   : > { %1213 = dma.done.wait (!%p970_p0), %s735_s11, 128  }
 0x528   : > { %1215 = vsyncadd (!%p970_p0), %s735_s11, 4294967168  ;;  %s743_s8 = sand.u32 1, %s1222_s18   ;;  %p1646_p4 = scmp.ne.s32.totalorder %s1638_s7, 0 }
 0x529   : > { %s744_s1 = scalar_lea.sflag [#allocation6], %s743_s8 }
 0x52a   : > { %p973_p1 = pnand %p976_p13, %p1646_p4 }
 0x52c   : > { %1217 = dma.done.wait (!%p973_p1), %s744_s1, 64  }
 0x52d   : > { %1219 = vsyncadd (!%p973_p1), %s744_s1, 4294967232  ;;  %s22_s30 = sadd.s32 1, %s1270_s30   ;;  %s1648_s10 = sld [smem:[#allocation13_spill]] }
 0x52e   : > { %p1568_p2 = scmp.ge.s32.totalorder %s22_s30, 10   ;;  %s1649_s17 = sld [smem:[#allocation12_spill]] }
 0x52f   : > { %s1650_s27 = sld [smem:[#allocation9_spill]]  ;;  %s1651_s7 = sld [smem:[#allocation10_spill]] }
 0x530   : > { %s1652_s13 = sld [smem:[#allocation11_spill]]  ;;  %s1653_s18 = smov %s1226_s19 }
 0x531   : > { %s1654_s19 = smov %s1230_s20  ;;  %s1655_s20 = smov %s1424_s29 }
 0x532   : > { %s1656_s21 = smov %s1238_s22  ;;  %s1657_s22 = smov %s1242_s23 }
 0x533   : > { %s1658_s23 = smov %s1648_s10  ;;  %s1659_s24 = smov %s1250_s25 }
 0x534   : > { %s1660_s25 = smov %s1649_s17  ;;  %s1661_s26 = smov %s1262_s28 }
 0x535   : > { %s1662_s28 = smov %s1651_s7  ;;  %21 = sbr.rel (!%p1568_p2) target bundleno = 16 (0x10), region = 139 }
 0x536   : > { %s1663_s29 = smov %s1652_s13 }
 0x53c   :  { %749 = vsyncpa [#allocation4], 1 }
 0x53d   :  { %751 = vsyncpa [#allocation4 + $0x1], 1 }
 0x53e   :  { %752 = vsyncpa [#allocation6], 1 }
 0x53f   :  { %754 = vsyncpa [#allocation6 + $0x1], 1 }

</bundles_post_ra>
